<compile_context>
chip_gen: v6e
topology: v6e:2x2x1
jax: 0.10.0
libtpu: 0.0.40
codegen_flags: <defaults>
</compile_context>

<pallas_src>
import jax
import jax.numpy as jnp
from jax.experimental import pallas as pl
from jax.experimental.pallas import tpu as pltpu

# ---- module hyperparameters (from Args) ----
EMBEDDED_OBS_SIZE = 1024
DETERMINISTIC_SIZE = 200
STOCHASTIC_SIZE = 30
HIDDEN = 200
IN_FEATURES = EMBEDDED_OBS_SIZE + DETERMINISTIC_SIZE   # 1224
OUT_FEATURES = 2 * STOCHASTIC_SIZE                     # 60

_ROW_TILE = 1024   # rows per grid step; ~12 MiB VMEM incl. double buffers,
                   # comfortably inside v7x's 32 MiB default scoped limit.


def _round_up(n, m):
    return ((n + m - 1) // m) * m


def _expm1(x):
    # expm1 from ops guaranteed to lower in Mosaic (exp/mul/where):
    # 3rd-order Taylor near 0 preserves PyTorch-ELU precision, exp(x)-1 else.
    taylor = x * (1.0 + x * (0.5 + x * (1.0 / 6.0)))
    return jnp.where(jnp.abs(x) < 1e-2, taylor, jnp.exp(x) - 1.0)


def _softplus(x):
    # Numerically stable softplus = max(x, 0) + log(1 + exp(-|x|)).
    return jnp.maximum(x, 0.0) + jnp.log(1.0 + jnp.exp(-jnp.abs(x)))


def _repr_kernel(obs_ref, det_ref, eps_ref,
                 w1a_ref, w1b_ref, b1_ref,
                 w2m_ref, w2s_ref, b2m_ref, b2s_ref,
                 mean_ref, std_ref, post_ref):
    """One row-tile of the RepresentationModel forward."""
    # h = ELU(obs @ w1a + det @ w1b + b1)  -- concat never materialized.
    h = (jnp.dot(obs_ref[...], w1a_ref[...], preferred_element_type=jnp.float32)
         + jnp.dot(det_ref[...], w1b_ref[...], preferred_element_type=jnp.float32)
         + b1_ref[...])
    h = jnp.where(h > 0.0, h, _expm1(h))            # ELU(alpha=1)
    h = h.astype(w2m_ref.dtype)                     # bf16 into the MXU

    mean = (jnp.dot(h, w2m_ref[...], preferred_element_type=jnp.float32)
            + b2m_ref[...])
    std_raw = (jnp.dot(h, w2s_ref[...], preferred_element_type=jnp.float32)
               + b2s_ref[...])
    std = _softplus(std_raw) + 0.1

    mean_ref[...] = mean
    std_ref[...] = std
    post_ref[...] = mean + std * eps_ref[...]       # Normal(mean, std).rsample()


def representation_model_forward(embedded_obs, deterministic, params, eps):
    """Returns (mean, std, posterior).  Normal(mean, std) fully parametrizes
    the posterior distribution; posterior = mean + std * eps (rsample)."""
    B = embedded_obs.shape[0]
    w1, b1, w2, b2 = params

    # Static weight splits (free) replace the activation concat and the
    # output chunk(2, dim=1).
    w1a = w1[:EMBEDDED_OBS_SIZE].astype(jnp.bfloat16)        # (1024, 200)
    w1b = w1[EMBEDDED_OBS_SIZE:].astype(jnp.bfloat16)        # (200, 200)
    w2m = w2[:, :STOCHASTIC_SIZE].astype(jnp.bfloat16)       # (200, 30)
    w2s = w2[:, STOCHASTIC_SIZE:].astype(jnp.bfloat16)       # (200, 30)
    b1r = b1.reshape(1, HIDDEN).astype(jnp.float32)
    b2m = b2[:STOCHASTIC_SIZE].reshape(1, STOCHASTIC_SIZE).astype(jnp.float32)
    b2s = b2[STOCHASTIC_SIZE:].reshape(1, STOCHASTIC_SIZE).astype(jnp.float32)

    # Row-tile the batch; pad so every block is full (and rows % 8 == 0).
    n_pad = _round_up(max(B, 8), 8)
    tile = min(_ROW_TILE, n_pad)
    n_pad = _round_up(n_pad, tile)
    grid = (n_pad // tile,)

    def pad_rows(x, dtype):
        x = x.astype(dtype)
        return jnp.pad(x, ((0, n_pad - B), (0, 0))) if n_pad != B else x

    obs_p = pad_rows(embedded_obs, jnp.bfloat16)
    det_p = pad_rows(deterministic, jnp.bfloat16)
    eps_p = pad_rows(eps, jnp.float32)

    def row_spec(width):
        return pl.BlockSpec((tile, width), lambda i: (i, 0))

    def const_spec(shape):
        return pl.BlockSpec(shape, lambda i: (0, 0))

    flops = 2 * n_pad * (EMBEDDED_OBS_SIZE * HIDDEN
                         + DETERMINISTIC_SIZE * HIDDEN
                         + HIDDEN * OUT_FEATURES)
    bytes_accessed = (n_pad * (EMBEDDED_OBS_SIZE + DETERMINISTIC_SIZE) * 2
                      + n_pad * 4 * STOCHASTIC_SIZE * 4
                      + (IN_FEATURES * HIDDEN + HIDDEN * OUT_FEATURES) * 2)

    mean, std, post = pl.pallas_call(
        _repr_kernel,
        out_shape=(
            jax.ShapeDtypeStruct((n_pad, STOCHASTIC_SIZE), jnp.float32),
            jax.ShapeDtypeStruct((n_pad, STOCHASTIC_SIZE), jnp.float32),
            jax.ShapeDtypeStruct((n_pad, STOCHASTIC_SIZE), jnp.float32),
        ),
        grid=grid,
        in_specs=[
            row_spec(EMBEDDED_OBS_SIZE),                 # embedded_obs tile
            row_spec(DETERMINISTIC_SIZE),                # deterministic tile
            row_spec(STOCHASTIC_SIZE),                   # eps tile
            const_spec((EMBEDDED_OBS_SIZE, HIDDEN)),     # w1a (resident)
            const_spec((DETERMINISTIC_SIZE, HIDDEN)),    # w1b (resident)
            const_spec((1, HIDDEN)),                     # b1
            const_spec((HIDDEN, STOCHASTIC_SIZE)),       # w2 mean half
            const_spec((HIDDEN, STOCHASTIC_SIZE)),       # w2 std half
            const_spec((1, STOCHASTIC_SIZE)),            # b2 mean half
            const_spec((1, STOCHASTIC_SIZE)),            # b2 std half
        ],
        out_specs=(
            row_spec(STOCHASTIC_SIZE),
            row_spec(STOCHASTIC_SIZE),
            row_spec(STOCHASTIC_SIZE),
        ),
        compiler_params=pltpu.CompilerParams(
            dimension_semantics=("parallel",)),
        cost_estimate=pl.CostEstimate(
            flops=flops,
            transcendentals=n_pad * (HIDDEN + STOCHASTIC_SIZE),
            bytes_accessed=bytes_accessed),
    )(obs_p, det_p, eps_p, w1a, w1b, b1r, w2m, w2s, b2m, b2s)

    return mean[:B], std[:B], post[:B]


def init_params(key):
    """nn.Linear with kaiming_uniform_ weights (bound = sqrt(6/fan_in)) and
    zero biases — matches initialize_weights(); stored as (in, out)."""
    k1, k2 = jax.random.split(key)
    bound1 = (6.0 / IN_FEATURES) ** 0.5
    bound2 = (6.0 / HIDDEN) ** 0.5
    w1 = jax.random.uniform(k1, (IN_FEATURES, HIDDEN), jnp.float32,
                            minval=-bound1, maxval=bound1)
    b1 = jnp.zeros((HIDDEN,), jnp.float32)
    w2 = jax.random.uniform(k2, (HIDDEN, OUT_FEATURES), jnp.float32,
                            minval=-bound2, maxval=bound2)
    b2 = jnp.zeros((OUT_FEATURES,), jnp.float32)
    return (w1, b1, w2, b2)


def _reference_forward(embedded_obs, deterministic, params, eps):
    """Pure-JAX reference mirroring the kernel's bf16-MXU / f32-accumulate path."""
    w1, b1, w2, b2 = params
    x = jnp.concatenate([embedded_obs, deterministic], axis=1)
    h = jnp.dot(x.astype(jnp.bfloat16), w1.astype(jnp.bfloat16),
                preferred_element_type=jnp.float32) + b1
    h = jnp.where(h > 0, h, jnp.expm1(h))
    y = jnp.dot(h.astype(jnp.bfloat16), w2.astype(jnp.bfloat16),
                preferred_element_type=jnp.float32) + b2
    mean, std_raw = y[:, :STOCHASTIC_SIZE], y[:, STOCHASTIC_SIZE:]
    std = jax.nn.softplus(std_raw) + 0.1
    return mean, std, mean + std * eps


if __name__ == "__main__":
    # Small shapes consistent with the module: batch=4, feature sizes from Args.
    B = 4
    key = jax.random.PRNGKey(0)
    k_obs, k_det, k_w, k_eps = jax.random.split(key, 4)

    embedded_obs = jax.random.normal(k_obs, (B, EMBEDDED_OBS_SIZE), jnp.float32)
    deterministic = jax.random.normal(k_det, (B, DETERMINISTIC_SIZE), jnp.float32)
    params = init_params(k_w)
    eps = jax.random.normal(k_eps, (B, STOCHASTIC_SIZE), jnp.float32)

    mean, std, posterior = representation_model_forward(
        embedded_obs, deterministic, params, eps)
    posterior = jax.block_until_ready(posterior)

    ref_mean, ref_std, ref_post = _reference_forward(
        embedded_obs, deterministic, params, eps)

    assert mean.shape == (B, STOCHASTIC_SIZE)
    assert std.shape == (B, STOCHASTIC_SIZE)
    assert posterior.shape == (B, STOCHASTIC_SIZE)
    assert bool(jnp.all(std >= 0.1))
    assert jnp.allclose(mean, ref_mean, atol=1e-2, rtol=1e-2)
    assert jnp.allclose(std, ref_std, atol=1e-2, rtol=1e-2)
    assert jnp.allclose(posterior, ref_post, atol=1e-2, rtol=1e-2)

    # TODO(synk): torch.distributions.Normal(mean, std) has no Pallas
    # equivalent; the kernel returns (mean, std) which fully parametrize it,
    # plus the reparameterized sample posterior = mean + std * eps.
    print("KERNEL_OK")
</pallas_src>

<mosaic_0001>
module attributes {stable_mosaic.version = 11 : i64} {
  func.func @_repr_kernel(%arg0: i32, %arg1: memref<8x1024xbf16, #tpu.memory_space<vmem>>, %arg2: memref<8x200xbf16, #tpu.memory_space<vmem>>, %arg3: memref<8x30xf32, #tpu.memory_space<vmem>>, %arg4: memref<1024x200xbf16, #tpu.memory_space<vmem>>, %arg5: memref<200x200xbf16, #tpu.memory_space<vmem>>, %arg6: memref<1x200xf32, #tpu.memory_space<vmem>>, %arg7: memref<200x30xbf16, #tpu.memory_space<vmem>>, %arg8: memref<200x30xbf16, #tpu.memory_space<vmem>>, %arg9: memref<1x30xf32, #tpu.memory_space<vmem>>, %arg10: memref<1x30xf32, #tpu.memory_space<vmem>>, %arg11: memref<8x30xf32, #tpu.memory_space<vmem>>, %arg12: memref<8x30xf32, #tpu.memory_space<vmem>>, %arg13: memref<8x30xf32, #tpu.memory_space<vmem>>) attributes {dimension_semantics = [#tpu.dimension_semantics<parallel>], iteration_bounds = array<i64: 1>, scalar_prefetch = 0 : i64, scratch_operands = 0 : i64, tpu.core_type = #tpu.core_type<tc>, window_params = [{transform_indices = @transform_0, window_bounds = array<i64: 8, 1024>}, {transform_indices = @transform_1, window_bounds = array<i64: 8, 200>}, {transform_indices = @transform_2, window_bounds = array<i64: 8, 30>}, {pipeline_mode = #tpu.pipeline_mode<synchronous>, transform_indices = @transform_3, window_bounds = array<i64: 1024, 200>}, {pipeline_mode = #tpu.pipeline_mode<synchronous>, transform_indices = @transform_4, window_bounds = array<i64: 200, 200>}, {pipeline_mode = #tpu.pipeline_mode<synchronous>, transform_indices = @transform_5, window_bounds = array<i64: 1, 200>}, {pipeline_mode = #tpu.pipeline_mode<synchronous>, transform_indices = @transform_6, window_bounds = array<i64: 200, 30>}, {pipeline_mode = #tpu.pipeline_mode<synchronous>, transform_indices = @transform_7, window_bounds = array<i64: 200, 30>}, {pipeline_mode = #tpu.pipeline_mode<synchronous>, transform_indices = @transform_8, window_bounds = array<i64: 1, 30>}, {pipeline_mode = #tpu.pipeline_mode<synchronous>, transform_indices = @transform_9, window_bounds = array<i64: 1, 30>}, {transform_indices = @transform_10, window_bounds = array<i64: 8, 30>}, {transform_indices = @transform_11, window_bounds = array<i64: 8, 30>}, {transform_indices = @transform_12, window_bounds = array<i64: 8, 30>}]} {
    %c0 = arith.constant 0 : index
    %c0_0 = arith.constant 0 : index
    %0 = vector.load %arg1[%c0, %c0_0] : memref<8x1024xbf16, #tpu.memory_space<vmem>>, vector<8x1024xbf16>
    %c0_1 = arith.constant 0 : index
    %c0_2 = arith.constant 0 : index
    %1 = vector.load %arg4[%c0_1, %c0_2] : memref<1024x200xbf16, #tpu.memory_space<vmem>>, vector<1024x200xbf16>
    %cst = arith.constant dense<0.000000e+00> : vector<8x200xf32>
    %2 = tpu.matmul %0, %1, %cst {dimension_numbers = #tpu.dot_dimension_numbers<[1], [0], [0], [1], [0, 0, 1, 1], [], []>} : vector<8x1024xbf16>, vector<1024x200xbf16>, vector<8x200xf32> -> vector<8x200xf32>
    %c0_3 = arith.constant 0 : index
    %c0_4 = arith.constant 0 : index
    %3 = vector.load %arg2[%c0_3, %c0_4] : memref<8x200xbf16, #tpu.memory_space<vmem>>, vector<8x200xbf16>
    %c0_5 = arith.constant 0 : index
    %c0_6 = arith.constant 0 : index
    %4 = vector.load %arg5[%c0_5, %c0_6] : memref<200x200xbf16, #tpu.memory_space<vmem>>, vector<200x200xbf16>
    %cst_7 = arith.constant dense<0.000000e+00> : vector<8x200xf32>
    %5 = tpu.matmul %3, %4, %cst_7 {dimension_numbers = #tpu.dot_dimension_numbers<[1], [0], [0], [1], [0, 0, 1, 1], [], []>} : vector<8x200xbf16>, vector<200x200xbf16>, vector<8x200xf32> -> vector<8x200xf32>
    %6 = arith.addf %2, %5 : vector<8x200xf32>
    %c0_8 = arith.constant 0 : index
    %c0_9 = arith.constant 0 : index
    %7 = vector.load %arg6[%c0_8, %c0_9] : memref<1x200xf32, #tpu.memory_space<vmem>>, vector<1x200xf32>
    %8 = vector.broadcast %7 : vector<1x200xf32> to vector<8x200xf32>
    %9 = arith.addf %6, %8 : vector<8x200xf32>
    %cst_10 = arith.constant 0.000000e+00 : f32
    %10 = vector.broadcast %cst_10 : f32 to vector<8x200xf32>
    %11 = arith.cmpf ogt, %9, %10 : vector<8x200xf32>
    %cst_11 = arith.constant 0.166666672 : f32
    %12 = vector.broadcast %cst_11 : f32 to vector<8x200xf32>
    %13 = arith.mulf %9, %12 : vector<8x200xf32>
    %cst_12 = arith.constant 5.000000e-01 : f32
    %14 = vector.broadcast %cst_12 : f32 to vector<8x200xf32>
    %15 = arith.addf %14, %13 : vector<8x200xf32>
    %16 = arith.mulf %9, %15 : vector<8x200xf32>
    %cst_13 = arith.constant 1.000000e+00 : f32
    %17 = vector.broadcast %cst_13 : f32 to vector<8x200xf32>
    %18 = arith.addf %17, %16 : vector<8x200xf32>
    %19 = arith.mulf %9, %18 : vector<8x200xf32>
    %20 = math.absf %9 : vector<8x200xf32>
    %cst_14 = arith.constant 0.00999999977 : f32
    %21 = vector.broadcast %cst_14 : f32 to vector<8x200xf32>
    %22 = arith.cmpf olt, %20, %21 : vector<8x200xf32>
    %23 = math.exp %9 : vector<8x200xf32>
    %cst_15 = arith.constant 1.000000e+00 : f32
    %24 = vector.broadcast %cst_15 : f32 to vector<8x200xf32>
    %25 = arith.subf %23, %24 : vector<8x200xf32>
    %26 = arith.select %22, %19, %25 : vector<8x200xi1>, vector<8x200xf32>
    %27 = arith.select %11, %9, %26 : vector<8x200xi1>, vector<8x200xf32>
    %28 = arith.truncf %27 : vector<8x200xf32> to vector<8x200xbf16>
    %c0_16 = arith.constant 0 : index
    %c0_17 = arith.constant 0 : index
    %29 = vector.load %arg7[%c0_16, %c0_17] : memref<200x30xbf16, #tpu.memory_space<vmem>>, vector<200x30xbf16>
    %cst_18 = arith.constant dense<0.000000e+00> : vector<8x30xf32>
    %30 = tpu.matmul %28, %29, %cst_18 {dimension_numbers = #tpu.dot_dimension_numbers<[1], [0], [0], [1], [0, 0, 1, 1], [], []>} : vector<8x200xbf16>, vector<200x30xbf16>, vector<8x30xf32> -> vector<8x30xf32>
    %c0_19 = arith.constant 0 : index
    %c0_20 = arith.constant 0 : index
    %31 = vector.load %arg9[%c0_19, %c0_20] : memref<1x30xf32, #tpu.memory_space<vmem>>, vector<1x30xf32>
    %32 = vector.broadcast %31 : vector<1x30xf32> to vector<8x30xf32>
    %33 = arith.addf %30, %32 : vector<8x30xf32>
    %c0_21 = arith.constant 0 : index
    %c0_22 = arith.constant 0 : index
    %34 = vector.load %arg8[%c0_21, %c0_22] : memref<200x30xbf16, #tpu.memory_space<vmem>>, vector<200x30xbf16>
    %cst_23 = arith.constant dense<0.000000e+00> : vector<8x30xf32>
    %35 = tpu.matmul %28, %34, %cst_23 {dimension_numbers = #tpu.dot_dimension_numbers<[1], [0], [0], [1], [0, 0, 1, 1], [], []>} : vector<8x200xbf16>, vector<200x30xbf16>, vector<8x30xf32> -> vector<8x30xf32>
    %c0_24 = arith.constant 0 : index
    %c0_25 = arith.constant 0 : index
    %36 = vector.load %arg10[%c0_24, %c0_25] : memref<1x30xf32, #tpu.memory_space<vmem>>, vector<1x30xf32>
    %37 = vector.broadcast %36 : vector<1x30xf32> to vector<8x30xf32>
    %38 = arith.addf %35, %37 : vector<8x30xf32>
    %cst_26 = arith.constant 0.000000e+00 : f32
    %39 = vector.broadcast %cst_26 : f32 to vector<8x30xf32>
    %40 = arith.maximumf %38, %39 : vector<8x30xf32>
    %41 = math.absf %38 : vector<8x30xf32>
    %cst_27 = arith.constant 0.000000e+00 : f32
    %42 = vector.broadcast %cst_27 : f32 to vector<8x30xf32>
    %43 = arith.subf %42, %41 : vector<8x30xf32>
    %44 = math.exp %43 : vector<8x30xf32>
    %cst_28 = arith.constant 1.000000e+00 : f32
    %45 = vector.broadcast %cst_28 : f32 to vector<8x30xf32>
    %46 = arith.addf %45, %44 : vector<8x30xf32>
    %47 = math.log %46 : vector<8x30xf32>
    %48 = arith.addf %40, %47 : vector<8x30xf32>
    %cst_29 = arith.constant 1.000000e-01 : f32
    %49 = vector.broadcast %cst_29 : f32 to vector<8x30xf32>
    %50 = arith.addf %48, %49 : vector<8x30xf32>
    %c0_30 = arith.constant 0 : index
    %c0_31 = arith.constant 0 : index
    %51 = vector.load %arg11[%c0_30, %c0_31] : memref<8x30xf32, #tpu.memory_space<vmem>>, vector<8x30xf32>
    tpu.vector_store %arg11[%c0_30, %c0_31], %33 {strides = array<i32>} : memref<8x30xf32, #tpu.memory_space<vmem>>, vector<8x30xf32>,
    %c0_32 = arith.constant 0 : index
    %c0_33 = arith.constant 0 : index
    %52 = vector.load %arg12[%c0_32, %c0_33] : memref<8x30xf32, #tpu.memory_space<vmem>>, vector<8x30xf32>
    tpu.vector_store %arg12[%c0_32, %c0_33], %50 {strides = array<i32>} : memref<8x30xf32, #tpu.memory_space<vmem>>, vector<8x30xf32>,
    %c0_34 = arith.constant 0 : index
    %c0_35 = arith.constant 0 : index
    %53 = vector.load %arg3[%c0_34, %c0_35] : memref<8x30xf32, #tpu.memory_space<vmem>>, vector<8x30xf32>
    %54 = arith.mulf %50, %53 : vector<8x30xf32>
    %55 = arith.addf %33, %54 : vector<8x30xf32>
    %c0_36 = arith.constant 0 : index
    %c0_37 = arith.constant 0 : index
    %56 = vector.load %arg13[%c0_36, %c0_37] : memref<8x30xf32, #tpu.memory_space<vmem>>, vector<8x30xf32>
    tpu.vector_store %arg13[%c0_36, %c0_37], %55 {strides = array<i32>} : memref<8x30xf32, #tpu.memory_space<vmem>>, vector<8x30xf32>,
    return
  }
  func.func @transform_0(%arg0: i32) -> (i32, i32) {
    %c0_i32 = arith.constant 0 : i32
    %c0_i32_0 = arith.constant 0 : i32
    return %arg0, %c0_i32 : i32, i32
  }
  func.func @transform_1(%arg0: i32) -> (i32, i32) {
    %c0_i32 = arith.constant 0 : i32
    %c0_i32_0 = arith.constant 0 : i32
    return %arg0, %c0_i32 : i32, i32
  }
  func.func @transform_2(%arg0: i32) -> (i32, i32) {
    %c0_i32 = arith.constant 0 : i32
    %c0_i32_0 = arith.constant 0 : i32
    return %arg0, %c0_i32 : i32, i32
  }
  func.func @transform_3(%arg0: i32) -> (i32, i32) {
    %c0_i32 = arith.constant 0 : i32
    %c0_i32_0 = arith.constant 0 : i32
    %c0_i32_1 = arith.constant 0 : i32
    return %c0_i32, %c0_i32_0 : i32, i32
  }
  func.func @transform_4(%arg0: i32) -> (i32, i32) {
    %c0_i32 = arith.constant 0 : i32
    %c0_i32_0 = arith.constant 0 : i32
    %c0_i32_1 = arith.constant 0 : i32
    return %c0_i32, %c0_i32_0 : i32, i32
  }
  func.func @transform_5(%arg0: i32) -> (i32, i32) {
    %c0_i32 = arith.constant 0 : i32
    %c0_i32_0 = arith.constant 0 : i32
    %c0_i32_1 = arith.constant 0 : i32
    return %c0_i32, %c0_i32_0 : i32, i32
  }
  func.func @transform_6(%arg0: i32) -> (i32, i32) {
    %c0_i32 = arith.constant 0 : i32
    %c0_i32_0 = arith.constant 0 : i32
    %c0_i32_1 = arith.constant 0 : i32
    return %c0_i32, %c0_i32_0 : i32, i32
  }
  func.func @transform_7(%arg0: i32) -> (i32, i32) {
    %c0_i32 = arith.constant 0 : i32
    %c0_i32_0 = arith.constant 0 : i32
    %c0_i32_1 = arith.constant 0 : i32
    return %c0_i32, %c0_i32_0 : i32, i32
  }
  func.func @transform_8(%arg0: i32) -> (i32, i32) {
    %c0_i32 = arith.constant 0 : i32
    %c0_i32_0 = arith.constant 0 : i32
    %c0_i32_1 = arith.constant 0 : i32
    return %c0_i32, %c0_i32_0 : i32, i32
  }
  func.func @transform_9(%arg0: i32) -> (i32, i32) {
    %c0_i32 = arith.constant 0 : i32
    %c0_i32_0 = arith.constant 0 : i32
    %c0_i32_1 = arith.constant 0 : i32
    return %c0_i32, %c0_i32_0 : i32, i32
  }
  func.func @transform_10(%arg0: i32) -> (i32, i32) {
    %c0_i32 = arith.constant 0 : i32
    %c0_i32_0 = arith.constant 0 : i32
    return %arg0, %c0_i32 : i32, i32
  }
  func.func @transform_11(%arg0: i32) -> (i32, i32) {
    %c0_i32 = arith.constant 0 : i32
    %c0_i32_0 = arith.constant 0 : i32
    return %arg0, %c0_i32 : i32, i32
  }
  func.func @transform_12(%arg0: i32) -> (i32, i32) {
    %c0_i32 = arith.constant 0 : i32
    %c0_i32_0 = arith.constant 0 : i32
    return %arg0, %c0_i32 : i32, i32
  }
}

</mosaic_0001>

<bundles_post_ra>
// kernel: tpu_custom_call.1
= control target key start
LH: loop header
LB: loop body
LE: loop exit
PB: predicated region body
PF: predicated region fallthrough
CT: control target
= control target key end

     0   :  { %18 = vsyncpa [#allocation3], 0  ;;  %vm334_vm0 = vcmask 1043456   ;;  %vm330_vm1 = vcmask 588800   ;;  %s2853_s0 = inlined_call_operand.vmem [shape: bf16[8,1024], index: 0, kind: input, shape index: {}]   ;;  %s2854_s1 = inlined_call_operand.vmem [shape: bf16[8,200], index: 1, kind: input, shape index: {}]   ;;  %s2855_s2 = inlined_call_operand.vmem [shape: f32[8,30], index: 2, kind: input, shape index: {}]   ;;  %s2856_s3 = inlined_call_operand.vmem [shape: bf16[1024,200], index: 3, kind: input, shape index: {}]   ;;  %s2857_s4 = inlined_call_operand.vmem [shape: bf16[200,200], index: 4, kind: input, shape index: {}]   ;;  %s2858_s5 = inlined_call_operand.vmem [shape: f32[1,200], index: 5, kind: input, shape index: {}]   ;;  %s2859_s6 = inlined_call_operand.vmem [shape: bf16[200,30], index: 6, kind: input, shape index: {}]   ;;  %s2860_s7 = inlined_call_operand.vmem [shape: bf16[200,30], index: 7, kind: input, shape index: {}]   ;;  %s2861_s8 = inlined_call_operand.vmem [shape: f32[1,30], index: 8, kind: input, shape index: {}]   ;;  %s2862_s9 = inlined_call_operand.vmem [shape: f32[1,30], index: 9, kind: input, shape index: {}]   ;;  %s2863_s10 = inlined_call_operand.hbm [shape: f32[8,30], index: 10, kind: output, shape index: {0}]   ;;  %s2864_s11 = inlined_call_operand.hbm [shape: f32[8,30], index: 11, kind: output, shape index: {1}]   ;;  %s2865_s12 = inlined_call_operand.hbm [shape: f32[8,30], index: 12, kind: output, shape index: {2}]  }
   0x1   :  { %v1819_v0 = vld [vmem:[%s2857_s4 + $0x74] ss:$8 sps:$4 sm:$0xff]   ;;  %v1823_v2 = vld [vmem:[%s2857_s4 + $0x70] ss:$8 sps:$4 sm:$0xff]   ;;  %v1825_v4 = vld [vmem:[%s2857_s4 + $0x64] ss:$8 sps:$4 sm:$0xff]  }
   0x2   :  { %v1821_v1 = vld [vmem:[%s2856_s3 + $0x74] ss:$8 sps:$4 sm:$0xff]   ;;  %341 = vmatprep.subr.bf16.mxu0 %v1819_v0  ;;  %v1824_v3 = vld [vmem:[%s2856_s3 + $0x70] ss:$8 sps:$4 sm:$0xff]   ;;  %v1827_v5 = vld [vmem:[%s2856_s3 + $0x64] ss:$8 sps:$4 sm:$0xff]  }
   0x3   :  { %1050 = vmatprep.subr.bf16.mxu1 %v1821_v1  ;;  %342 = vmatpush1.bf16.msra.mxu0 %v1823_v2  ;;  %v1829_v6 = vld [vmem:[%s2857_s4 + $0x60] ss:$8 sps:$4 sm:$0xff]   ;;  %v1831_v8 = vld [vmem:[%s2857_s4 + $0x54] ss:$8 sps:$4 sm:$0xff]   ;;  %v1835_v10 = vld [vmem:[%s2857_s4 + $0x50] ss:$8 sps:$4 sm:$0xff]  }
   0x4   :  { %1051 = vmatpush1.bf16.msra.mxu1 %v1824_v3  ;;  %343 = vmatprep.subr.bf16.mxu0 %v1825_v4  ;;  %v1830_v7 = vld [vmem:[%s2856_s3 + $0x60] ss:$8 sps:$4 sm:$0xff]   ;;  %v1833_v9 = vld [vmem:[%s2856_s3 + $0x54] ss:$8 sps:$4 sm:$0xff]   ;;  %v1836_v11 = vld [vmem:[%s2856_s3 + $0x50] ss:$8 sps:$4 sm:$0xff]  }
   0x5   :  { %1052 = vmatprep.subr.bf16.mxu1 %v1827_v5  ;;  %v1837_v12 = vld [vmem:[%s2857_s4 + $0x44] ss:$8 sps:$4 sm:$0xff]   ;;  %v1841_v14 = vld [vmem:[%s2857_s4 + $0x40] ss:$8 sps:$4 sm:$0xff]   ;;  %v1843_v16 = vld [vmem:[%s2857_s4 + $0x34] ss:$8 sps:$4 sm:$0xff]  }
   0x6   :  { %v1839_v13 = vld [vmem:[%s2856_s3 + $0x44] ss:$8 sps:$4 sm:$0xff]   ;;  %v1842_v15 = vld [vmem:[%s2856_s3 + $0x40] ss:$8 sps:$4 sm:$0xff]   ;;  %v1845_v17 = vld [vmem:[%s2856_s3 + $0x34] ss:$8 sps:$4 sm:$0xff]  }
   0x7   :  { %344 = vmatpush1.bf16.msra.mxu0 %v1829_v6  ;;  %v1847_v18 = vld [vmem:[%s2857_s4 + $0x30] ss:$8 sps:$4 sm:$0xff]   ;;  %v1849_v20 = vld [vmem:[%s2857_s4 + $0x24] ss:$8 sps:$4 sm:$0xff]   ;;  %v1853_v22 = vld [vmem:[%s2857_s4 + $0x20] ss:$8 sps:$4 sm:$0xff]  }
   0x8   :  { %1053 = vmatpush1.bf16.msra.mxu1 %v1830_v7  ;;  %345 = vmatprep.subr.bf16.mxu0 %v1831_v8  ;;  %v1848_v19 = vld [vmem:[%s2856_s3 + $0x30] ss:$8 sps:$4 sm:$0xff]   ;;  %v1851_v21 = vld [vmem:[%s2856_s3 + $0x24] ss:$8 sps:$4 sm:$0xff]   ;;  %v1854_v23 = vld [vmem:[%s2856_s3 + $0x20] ss:$8 sps:$4 sm:$0xff]  }
   0x9   :  { %1054 = vmatprep.subr.bf16.mxu1 %v1833_v9  ;;  %v1855_v24 = vld [vmem:[%s2857_s4 + $0x14] ss:$8 sps:$4 sm:$0xff]   ;;  %v1859_v26 = vld [vmem:[%s2857_s4 + $0x10] ss:$8 sps:$4 sm:$0xff]   ;;  %v1861_v28 = vld [vmem:[%s2857_s4 + $0x4] ss:$8 sps:$4 sm:$0xff]  }
   0xa   :  { %v1857_v25 = vld [vmem:[%s2856_s3 + $0x14] ss:$8 sps:$4 sm:$0xff]   ;;  %v1860_v27 = vld [vmem:[%s2856_s3 + $0x10] ss:$8 sps:$4 sm:$0xff]   ;;  %v1863_v29 = vld [vmem:[%s2856_s3 + $0x4] ss:$8 sps:$4 sm:$0xff]  }
   0xb   :  { %346 = vmatpush1.bf16.msra.mxu0 %v1835_v10  ;;  %v198_v30 = vld [vmem:[%s2857_s4 + $0xc0] sm:$0xff]  ;;  %v1868_v34 = vld [vmem:[%s2856_s3 + $0xf4] ss:$8 sps:$4 sm:$0xff]   ;;  %v1871_v36 = vld [vmem:[%s2856_s3 + $0xf0] ss:$8 sps:$4 sm:$0xff]  }
   0xc   :  { %1055 = vmatpush1.bf16.msra.mxu1 %v1836_v11  ;;  %347 = vmatprep.subr.bf16.mxu0 %v1837_v12  ;;  %v1865_v31 = vld [vmem:[%s2857_s4] ss:$8 sps:$4 sm:$0xff]   ;;  %v1644_v33 = vcombine.high %v198_v30, %v198_v30  ;;  %v1643_v35 = vcombine.low %v198_v30, %v198_v30  ;;  %v1872_v38 = vld [vmem:[%s2857_s4 + $0xb4] ss:$8 sps:$4 sm:$0xff]   ;;  %v1874_v39 = vld [vmem:[%s2856_s3 + $0xe4] ss:$8 sps:$4 sm:$0xff]  }
   0xd   :  { %1056 = vmatprep.subr.bf16.mxu1 %v1839_v13  ;;  %v1866_v32 = vld [vmem:[%s2856_s3] ss:$8 sps:$4 sm:$0xff]   ;;  %v1876_v42 = vld [vmem:[%s2857_s4 + $0xb0] ss:$8 sps:$4 sm:$0xff]   ;;  %v1878_v44 = vld [vmem:[%s2857_s4 + $0xa4] ss:$8 sps:$4 sm:$0xff]  }
   0xe   :  { %v336_v37 = vsel %vm334_vm0, %v1643_v35, 0  ;;  %v173_v40 = vld [vmem:[%s2854_s1] sm:$0xff]  ;;  %v1880_v45 = vld [vmem:[%s2856_s3 + $0xd4] ss:$8 sps:$4 sm:$0xff]   ;;  %v1883_v47 = vld [vmem:[%s2856_s3 + $0xd0] ss:$8 sps:$4 sm:$0xff]  }
   0xf   :  { %348 = vmatpush1.bf16.msra.mxu0 %v1841_v14  ;;  %v1618_v41 = vcombine.high %v173_v40, %v173_v40  ;;  %v1877_v43 = vld [vmem:[%s2856_s3 + $0xe0] ss:$8 sps:$4 sm:$0xff]   ;;  %v1884_v48 = vld [vmem:[%s2857_s4 + $0x94] ss:$8 sps:$4 sm:$0xff]   ;;  %v1886_v49 = vld [vmem:[%s2856_s3 + $0xc4] ss:$8 sps:$4 sm:$0xff]   ;;  %v1617_v60 = vcombine.low %v173_v40, %v173_v40 }
  0x10   :  { %1057 = vmatpush1.bf16.msra.mxu1 %v1842_v15  ;;  %349 = vmatprep.subr.bf16.mxu0 %v1843_v16  ;;  %v1882_v46 = vld [vmem:[%s2857_s4 + $0xa0] ss:$8 sps:$4 sm:$0xff]   ;;  %v1888_v51 = vld [vmem:[%s2857_s4 + $0x90] ss:$8 sps:$4 sm:$0xff]   ;;  %v1890_v54 = vld [vmem:[%s2857_s4 + $0x84] ss:$8 sps:$4 sm:$0xff]  }
  0x11   :  { %1058 = vmatprep.subr.bf16.mxu1 %v1845_v17  ;;  %1646 = vmatprep.mubr.msk.bf16.mxu0 %vm330_vm1, %v1618_v41  ;;  %v41_v50 = vld [vmem:[%s2853_s0] sm:$0xff]  ;;  %v1892_v55 = vld [vmem:[%s2856_s3 + $0xb4] ss:$8 sps:$4 sm:$0xff]   ;;  %v1895_v57 = vld [vmem:[%s2856_s3 + $0xb0] ss:$8 sps:$4 sm:$0xff]  }
  0x12   :  { %v1648_v52 = vcombine.high %v41_v50, %v41_v50  ;;  %v1889_v53 = vld [vmem:[%s2856_s3 + $0xc0] ss:$8 sps:$4 sm:$0xff]   ;;  %v1898_v58 = vld [vmem:[%s2856_s3 + $0xa4] ss:$8 sps:$4 sm:$0xff]   ;;  %v1902_v59 = vld [vmem:[%s2856_s3 + $0x174] ss:$8 sps:$4 sm:$0xff]   ;;  %v1647_v9 = vcombine.low %v41_v50, %v41_v50 }
  0x13   :  { %350 = vmatpush1.bf16.msra.mxu0 %v1847_v18  ;;  %v1894_v56 = vld [vmem:[%s2857_s4 + $0x80] ss:$8 sps:$4 sm:$0xff]   ;;  %v1900_v61 = vld [vmem:[%s2856_s3 + $0x170] ss:$8 sps:$4 sm:$0xff]   ;;  %v1904_v63 = vld [vmem:[%s2856_s3 + $0x94] ss:$8 sps:$4 sm:$0xff]  }
  0x14   :  { %1059 = vmatpush1.bf16.msra.mxu1 %v1848_v19  ;;  %351 = vmatprep.subr.bf16.mxu0 %v1849_v20  ;;  %v1903_v62 = vld [vmem:[%s2856_s3 + $0xa0] ss:$8 sps:$4 sm:$0xff]   ;;  %v1908_v0 = vld [vmem:[%s2856_s3 + $0x164] ss:$8 sps:$4 sm:$0xff]   ;;  %v1909_v2 = vld [vmem:[%s2856_s3 + $0x90] ss:$8 sps:$4 sm:$0xff]  }
  0x15   :  { %1060 = vmatprep.subr.bf16.mxu1 %v1851_v21  ;;  %1082 = vmatprep.mubr.bf16.mxu1 %v1648_v52  ;;  %v1906_v1 = vld [vmem:[%s2856_s3 + $0x160] ss:$8 sps:$4 sm:$0xff]   ;;  %v1910_v3 = vld [vmem:[%s2856_s3 + $0x84] ss:$8 sps:$4 sm:$0xff]   ;;  %v1914_v4 = vld [vmem:[%s2856_s3 + $0x154] ss:$8 sps:$4 sm:$0xff]  }
  0x16   :  { %v1912_v5 = vld [vmem:[%s2856_s3 + $0x150] ss:$8 sps:$4 sm:$0xff]   ;;  %v1915_v6 = vld [vmem:[%s2856_s3 + $0x80] ss:$8 sps:$4 sm:$0xff]   ;;  %v1920_v7 = vld [vmem:[%s2856_s3 + $0x144] ss:$8 sps:$4 sm:$0xff]  }
  0x17   :  { %352 = vmatpush1.bf16.msra.mxu0 %v1853_v22  ;;  %v1923_v8 = vld [vmem:[%s2856_s3 + $0x274] ss:$8 sps:$4 sm:$0xff]   ;;  %v1918_v10 = vld [vmem:[%s2856_s3 + $0x140] ss:$8 sps:$4 sm:$0xff]   ;;  %v1921_v11 = vld [vmem:[%s2856_s3 + $0x270] ss:$8 sps:$4 sm:$0xff]  }
  0x18   :  { %1061 = vmatpush1.bf16.msra.mxu1 %v1854_v23  ;;  %353 = vmatprep.subr.bf16.mxu0 %v1855_v24  ;;  %v1926_v12 = vld [vmem:[%s2856_s3 + $0x134] ss:$8 sps:$4 sm:$0xff]   ;;  %v1929_v13 = vld [vmem:[%s2856_s3 + $0x264] ss:$8 sps:$4 sm:$0xff]   ;;  %v1924_v14 = vld [vmem:[%s2856_s3 + $0x130] ss:$8 sps:$4 sm:$0xff]  }
  0x19   :  { %1062 = vmatprep.subr.bf16.mxu1 %v1857_v25  ;;  %v1927_v15 = vld [vmem:[%s2856_s3 + $0x260] ss:$8 sps:$4 sm:$0xff]   ;;  %v1932_v16 = vld [vmem:[%s2856_s3 + $0x124] ss:$8 sps:$4 sm:$0xff]   ;;  %v1935_v17 = vld [vmem:[%s2856_s3 + $0x254] ss:$8 sps:$4 sm:$0xff]  }
  0x1a   :  { %v1930_v18 = vld [vmem:[%s2856_s3 + $0x120] ss:$8 sps:$4 sm:$0xff]   ;;  %v1933_v19 = vld [vmem:[%s2856_s3 + $0x250] ss:$8 sps:$4 sm:$0xff]   ;;  %v1938_v20 = vld [vmem:[%s2856_s3 + $0x114] ss:$8 sps:$4 sm:$0xff]  }
  0x1b   :  { %354 = vmatpush1.bf16.msra.mxu0 %v1859_v26  ;;  %v1941_v21 = vld [vmem:[%s2856_s3 + $0x244] ss:$8 sps:$4 sm:$0xff]   ;;  %v1936_v22 = vld [vmem:[%s2856_s3 + $0x110] ss:$8 sps:$4 sm:$0xff]   ;;  %v1939_v23 = vld [vmem:[%s2856_s3 + $0x240] ss:$8 sps:$4 sm:$0xff]  }
  0x1c   :  { %1063 = vmatpush1.bf16.msra.mxu1 %v1860_v27  ;;  %355 = vmatprep.subr.bf16.mxu0 %v1861_v28  ;;  %v1944_v24 = vld [vmem:[%s2856_s3 + $0x104] ss:$8 sps:$4 sm:$0xff]   ;;  %v1947_v25 = vld [vmem:[%s2856_s3 + $0x234] ss:$8 sps:$4 sm:$0xff]   ;;  %v1942_v28 = vld [vmem:[%s2856_s3 + $0x100] ss:$8 sps:$4 sm:$0xff]  }
  0x1d   :  { %1064 = vmatprep.subr.bf16.mxu1 %v1863_v29  ;;  %v2481_v26 = vld [vmem:[%s2853_s0 + $0x8] sm:$0xff]  ;;  %v1945_v29 = vld [vmem:[%s2856_s3 + $0x230] ss:$8 sps:$4 sm:$0xff]   ;;  %v1950_v30 = vld [vmem:[%s2856_s3 + $0x1f4] ss:$8 sps:$4 sm:$0xff]  }
  0x1e   :  { %v1650_v27 = vcombine.high %v2481_v26, %v2481_v26  ;;  %v1959_v35 = vld [vmem:[%s2856_s3 + $0x214] ss:$8 sps:$4 sm:$0xff]   ;;  %v1965_v41 = vld [vmem:[%s2856_s3 + $0x204] ss:$8 sps:$4 sm:$0xff]   ;;  %v1972_v50 = vld [vmem:[%s2856_s3 + $0x1b0] ss:$8 sps:$4 sm:$0xff]  }
  0x1f   :  { %356 = vmatpush1.bf16.msra.mxu0 %v1865_v31  ;;  %v1953_v31 = vld [vmem:[%s2856_s3 + $0x224] ss:$8 sps:$4 sm:$0xff]   ;;  %v1962_v40 = vld [vmem:[%s2856_s3 + $0x1d4] ss:$8 sps:$4 sm:$0xff]  }
  0x20   :  { %1065 = vmatpush1.bf16.msra.mxu1 %v1866_v32  ;;  %1645 = vmatprep.subr.msk.bf16.mxu0 %vm334_vm0, %v1644_v33  ;;  %v1948_v32 = vld [vmem:[%s2856_s3 + $0x1f0] ss:$8 sps:$4 sm:$0xff]   ;;  %v1951_v33 = vld [vmem:[%s2856_s3 + $0x220] ss:$8 sps:$4 sm:$0xff]   ;;  %v1980_v52 = vld [vmem:[%s2856_s3 + $0x1a4] ss:$8 sps:$4 sm:$0xff]  }
  0x21   :  { %1066 = vmatprep.subr.bf16.mxu1 %v1868_v34  ;;  %v1956_v34 = vld [vmem:[%s2856_s3 + $0x1e4] ss:$8 sps:$4 sm:$0xff]  }
  0x23   :  { %364 = vmatpush2.bf16.msra.mxu0 %v336_v37 }
  0x24   :  { %1067 = vmatpush2.bf16.msra.mxu1 %v1871_v36  ;;  %365 = vmatprep.subr.bf16.mxu0 %v1872_v38  ;;  %v2512_v36 = vld [vmem:[%s2853_s0 + $0x10] sm:$0xff]  ;;  %v1954_v38 = vld [vmem:[%s2856_s3 + $0x1e0] ss:$8 sps:$4 sm:$0xff]  }
  0x25   :  { %1068 = vmatprep.subr.bf16.mxu1 %v1874_v39  ;;  %v1652_v37 = vcombine.high %v2512_v36, %v2512_v36  ;;  %v1957_v39 = vld [vmem:[%s2856_s3 + $0x210] ss:$8 sps:$4 sm:$0xff]  }
  0x27   :  { %366 = vmatpush2.bf16.msra.mxu0 %v1876_v42  ;;  %v1960_v42 = vld [vmem:[%s2856_s3 + $0x1d0] ss:$8 sps:$4 sm:$0xff]  }
  0x28   :  { %1069 = vmatpush2.bf16.msra.mxu1 %v1877_v43  ;;  %367 = vmatprep.subr.bf16.mxu0 %v1878_v44  ;;  %v1963_v43 = vld [vmem:[%s2856_s3 + $0x200] ss:$8 sps:$4 sm:$0xff]   ;;  %v1968_v44 = vld [vmem:[%s2856_s3 + $0x1c4] ss:$8 sps:$4 sm:$0xff]  }
  0x29   :  { %1070 = vmatprep.subr.bf16.mxu1 %v1880_v45  ;;  %v1971_v45 = vld [vmem:[%s2856_s3 + $0x2f4] ss:$8 sps:$4 sm:$0xff]  }
  0x2b   :  { %368 = vmatpush2.bf16.msra.mxu0 %v1882_v46  ;;  %v1966_v46 = vld [vmem:[%s2856_s3 + $0x1c0] ss:$8 sps:$4 sm:$0xff]  }
  0x2c   :  { %1071 = vmatpush2.bf16.msra.mxu1 %v1883_v47  ;;  %369 = vmatprep.subr.bf16.mxu0 %v1884_v48  ;;  %v1969_v47 = vld [vmem:[%s2856_s3 + $0x2f0] ss:$8 sps:$4 sm:$0xff]   ;;  %v1974_v48 = vld [vmem:[%s2856_s3 + $0x1b4] ss:$8 sps:$4 sm:$0xff]  }
  0x2d   :  { %1072 = vmatprep.subr.bf16.mxu1 %v1886_v49  ;;  %v1977_v49 = vld [vmem:[%s2856_s3 + $0x2e4] ss:$8 sps:$4 sm:$0xff]  }
  0x2f   :  { %370 = vmatpush2.bf16.msra.mxu0 %v1888_v51  ;;  %v1975_v51 = vld [vmem:[%s2856_s3 + $0x2e0] ss:$8 sps:$4 sm:$0xff]  }
  0x30   :  { %1073 = vmatpush2.bf16.msra.mxu1 %v1889_v53  ;;  %371 = vmatprep.subr.bf16.mxu0 %v1890_v54  ;;  %v1983_v53 = vld [vmem:[%s2856_s3 + $0x2d4] ss:$8 sps:$4 sm:$0xff]   ;;  %v1978_v54 = vld [vmem:[%s2856_s3 + $0x1a0] ss:$8 sps:$4 sm:$0xff]  }
  0x31   :  { %1074 = vmatprep.subr.bf16.mxu1 %v1892_v55  ;;  %v1981_v55 = vld [vmem:[%s2856_s3 + $0x2d0] ss:$8 sps:$4 sm:$0xff]  }
  0x33   :  { %372 = vmatpush2.bf16.msra.mxu0 %v1894_v56  ;;  %v1986_v56 = vld [vmem:[%s2856_s3 + $0x194] ss:$8 sps:$4 sm:$0xff]  }
  0x34   :  { %1075 = vmatpush2.bf16.msra.mxu1 %v1895_v57  ;;  %1091 = vmatprep.subr.bf16.mxu0 %v1902_v59  ;;  %v1989_v57 = vld [vmem:[%s2856_s3 + $0x2c4] ss:$8 sps:$4 sm:$0xff]   ;;  %v1987_v59 = vld [vmem:[%s2856_s3 + $0x2c0] ss:$8 sps:$4 sm:$0xff]  }
  0x35   :  { %1076 = vmatprep.subr.bf16.mxu1 %v1898_v58  ;;  %v1984_v58 = vld [vmem:[%s2856_s3 + $0x190] ss:$8 sps:$4 sm:$0xff]  }
  0x36   :  { %374 = vmatmul.mubr.bf16.vlgmr.msra.gmra.mxu0 %v1617_v60  ;;  %v1992_v60 = vld [vmem:[%s2856_s3 + $0x184] ss:$8 sps:$4 sm:$0xff]  }
  0x37   :  { %1092 = vmatpush1.bf16.msra.mxu0 %v1900_v61  ;;  %1123 = vmatprep.mubr.bf16.mxu0 %v1650_v27  ;;  %v1995_v61 = vld [vmem:[%s2856_s3 + $0x2b4] ss:$8 sps:$4 sm:$0xff]  }
  0x38   :  { %1077 = vmatpush2.bf16.msra.mxu1 %v1903_v62  ;;  %1093 = vmatprep.subr.bf16.mxu0 %v1908_v0  ;;  %v1990_v62 = vld [vmem:[%s2856_s3 + $0x180] ss:$8 sps:$4 sm:$0xff]   ;;  %v2000_v0 = vld [vmem:[%s2856_s3 + $0x2a4] ss:$8 sps:$4 sm:$0xff]  }
  0x39   :  { %1078 = vmatprep.subr.bf16.mxu1 %v1904_v63  ;;  %v1993_v63 = vld [vmem:[%s2856_s3 + $0x2b0] ss:$8 sps:$4 sm:$0xff]  }
  0x3b   :  { %1094 = vmatpush1.bf16.msra.mxu0 %v1906_v1  ;;  %v2003_v1 = vld [vmem:[%s2856_s3 + $0x374] ss:$8 sps:$4 sm:$0xff]  }
  0x3c   :  { %1079 = vmatpush2.bf16.msra.mxu1 %v1909_v2  ;;  %1095 = vmatprep.subr.bf16.mxu0 %v1914_v4  ;;  %v2603_v2 = vld [vmem:[%s2853_s0 + $0x18] sm:$0xff] }
  0x3d   :  { %1080 = vmatprep.subr.bf16.mxu1 %v1910_v3  ;;  %v1998_v3 = vld [vmem:[%s2856_s3 + $0x2a0] ss:$8 sps:$4 sm:$0xff]   ;;  %v2001_v4 = vld [vmem:[%s2856_s3 + $0x370] ss:$8 sps:$4 sm:$0xff]  }
  0x3f   :  { %1096 = vmatpush1.bf16.msra.mxu0 %v1912_v5  ;;  %v1649_v5 = vcombine.low %v2481_v26, %v2481_v26 }
  0x40   :  { %1081 = vmatpush2.bf16.msra.mxu1 %v1915_v6  ;;  %1097 = vmatprep.subr.bf16.mxu0 %v1920_v7  ;;  %v2006_v6 = vld [vmem:[%s2856_s3 + $0x294] ss:$8 sps:$4 sm:$0xff]   ;;  %v2009_v7 = vld [vmem:[%s2856_s3 + $0x364] ss:$8 sps:$4 sm:$0xff]  }
  0x41   :  { %1132 = vmatprep.subr.bf16.mxu1 %v1923_v8  ;;  %v1654_v8 = vcombine.high %v2603_v2, %v2603_v2 }
  0x43   :  { %1083 = vmatmul.mubr.bf16.vlgmr.msra.gmra.mxu1 %v1647_v9  ;;  %1098 = vmatpush1.bf16.msra.mxu0 %v1918_v10  ;;  %v2004_v9 = vld [vmem:[%s2856_s3 + $0x290] ss:$8 sps:$4 sm:$0xff]   ;;  %v2007_v10 = vld [vmem:[%s2856_s3 + $0x360] ss:$8 sps:$4 sm:$0xff]  }
  0x44   :  { %1133 = vmatpush1.bf16.msra.mxu1 %v1921_v11  ;;  %1099 = vmatprep.subr.bf16.mxu0 %v1926_v12 }
  0x45   :  { %1134 = vmatprep.subr.bf16.mxu1 %v1929_v13  ;;  %1164 = vmatprep.mubr.bf16.mxu1 %v1652_v37 }
  0x47   :  { %1100 = vmatpush1.bf16.msra.mxu0 %v1924_v14 }
  0x48   :  { %1135 = vmatpush1.bf16.msra.mxu1 %v1927_v15  ;;  %1101 = vmatprep.subr.bf16.mxu0 %v1932_v16 }
  0x49   :  { %1136 = vmatprep.subr.bf16.mxu1 %v1935_v17 }
  0x4b   :  { %1102 = vmatpush1.bf16.msra.mxu0 %v1930_v18 }
  0x4c   :  { %1137 = vmatpush1.bf16.msra.mxu1 %v1933_v19  ;;  %1103 = vmatprep.subr.bf16.mxu0 %v1938_v20 }
  0x4d   :  { %1138 = vmatprep.subr.bf16.mxu1 %v1941_v21 }
  0x4f   :  { %1104 = vmatpush1.bf16.msra.mxu0 %v1936_v22 }
  0x50   :  { %1139 = vmatpush1.bf16.msra.mxu1 %v1939_v23  ;;  %1105 = vmatprep.subr.bf16.mxu0 %v1944_v24 }
  0x51   :  { %1140 = vmatprep.subr.bf16.mxu1 %v1947_v25 }
  0x53   :  { %1106 = vmatpush1.bf16.msra.mxu0 %v1942_v28 }
  0x54   :  { %1141 = vmatpush1.bf16.msra.mxu1 %v1945_v29  ;;  %1107 = vmatprep.subr.bf16.mxu0 %v1950_v30 }
  0x55   :  { %1142 = vmatprep.subr.bf16.mxu1 %v1953_v31 }
  0x57   :  { %1108 = vmatpush2.bf16.msra.mxu0 %v1948_v32 }
  0x58   :  { %1143 = vmatpush1.bf16.msra.mxu1 %v1951_v33  ;;  %1109 = vmatprep.subr.bf16.mxu0 %v1956_v34 }
  0x59   :  { %1144 = vmatprep.subr.bf16.mxu1 %v1959_v35 }
  0x5b   :  { %1110 = vmatpush2.bf16.msra.mxu0 %v1954_v38 }
  0x5c   :  { %1145 = vmatpush1.bf16.msra.mxu1 %v1957_v39  ;;  %1111 = vmatprep.subr.bf16.mxu0 %v1962_v40 }
  0x5d   :  { %1146 = vmatprep.subr.bf16.mxu1 %v1965_v41 }
  0x5f   :  { %1112 = vmatpush2.bf16.msra.mxu0 %v1960_v42 }
  0x60   :  { %1147 = vmatpush1.bf16.msra.mxu1 %v1963_v43  ;;  %1113 = vmatprep.subr.bf16.mxu0 %v1968_v44 }
  0x61   :  { %1148 = vmatprep.subr.bf16.mxu1 %v1971_v45 }
  0x63   :  { %1114 = vmatpush2.bf16.msra.mxu0 %v1966_v46 }
  0x64   :  { %1149 = vmatpush2.bf16.msra.mxu1 %v1969_v47  ;;  %1115 = vmatprep.subr.bf16.mxu0 %v1974_v48 }
  0x65   :  { %1150 = vmatprep.subr.bf16.mxu1 %v1977_v49 }
  0x67   :  { %1116 = vmatpush2.bf16.msra.mxu0 %v1972_v50 }
  0x68   :  { %1151 = vmatpush2.bf16.msra.mxu1 %v1975_v51  ;;  %1117 = vmatprep.subr.bf16.mxu0 %v1980_v52 }
  0x69   :  { %1152 = vmatprep.subr.bf16.mxu1 %v1983_v53 }
  0x6b   :  { %1118 = vmatpush2.bf16.msra.mxu0 %v1978_v54 }
  0x6c   :  { %1153 = vmatpush2.bf16.msra.mxu1 %v1981_v55  ;;  %1119 = vmatprep.subr.bf16.mxu0 %v1986_v56 }
  0x6d   :  { %1154 = vmatprep.subr.bf16.mxu1 %v1989_v57 }
  0x6f   :  { %1120 = vmatpush2.bf16.msra.mxu0 %v1984_v58 }
  0x70   :  { %1155 = vmatpush2.bf16.msra.mxu1 %v1987_v59  ;;  %1121 = vmatprep.subr.bf16.mxu0 %v1992_v60 }
  0x71   :  { %1156 = vmatprep.subr.bf16.mxu1 %v1995_v61 }
  0x73   :  { %1122 = vmatpush2.bf16.msra.mxu0 %v1990_v62 }
  0x74   :  { %1157 = vmatpush2.bf16.msra.mxu1 %v1993_v63  ;;  %1173 = vmatprep.subr.bf16.mxu0 %v2003_v1 }
  0x75   :  { %1158 = vmatprep.subr.bf16.mxu1 %v2000_v0 }
  0x76   :  { %1124 = vmatmul.mubr.bf16.vlgmr.msra.gmra.mxu0 %v1649_v5 }
  0x77   :  { %1174 = vmatpush1.bf16.msra.mxu0 %v2001_v4 }
  0x78   :  { %1159 = vmatpush2.bf16.msra.mxu1 %v1998_v3 }
  0x79   :  { %19 = vsyncpa [#allocation5], 0  ;;  %1160 = vmatprep.subr.bf16.mxu1 %v2006_v6  ;;  %1175 = vmatprep.subr.bf16.mxu0 %v2009_v7  ;;  %v2012_v11 = vld [vmem:[%s2856_s3 + $0x284] ss:$8 sps:$4 sm:$0xff]   ;;  %v2015_v12 = vld [vmem:[%s2856_s3 + $0x354] ss:$8 sps:$4 sm:$0xff]   ;;  %v1651_v16 = vcombine.low %v2512_v36, %v2512_v36  ;;  %v1653_v42 = vcombine.low %v2603_v2, %v2603_v2 }
  0x7a   :  { %1205 = vmatprep.mubr.bf16.mxu0 %v1654_v8  ;;  %v2010_v13 = vld [vmem:[%s2856_s3 + $0x280] ss:$8 sps:$4 sm:$0xff]   ;;  %v2013_v14 = vld [vmem:[%s2856_s3 + $0x350] ss:$8 sps:$4 sm:$0xff]   ;;  %v2020_v15 = vld [vmem:[%s2856_s3 + $0x344] ss:$8 sps:$4 sm:$0xff]  }
  0x7b   :  { %1176 = vmatpush1.bf16.msra.mxu0 %v2007_v10  ;;  %v2018_v17 = vld [vmem:[%s2856_s3 + $0x340] ss:$8 sps:$4 sm:$0xff]   ;;  %v2023_v18 = vld [vmem:[%s2856_s3 + $0x334] ss:$8 sps:$4 sm:$0xff]   ;;  %v2021_v19 = vld [vmem:[%s2856_s3 + $0x330] ss:$8 sps:$4 sm:$0xff]  }
  0x7c   :  { %1161 = vmatpush2.bf16.msra.mxu1 %v2004_v9  ;;  %1177 = vmatprep.subr.bf16.mxu0 %v2015_v12  ;;  %v2026_v20 = vld [vmem:[%s2856_s3 + $0x324] ss:$8 sps:$4 sm:$0xff]   ;;  %v2024_v21 = vld [vmem:[%s2856_s3 + $0x320] ss:$8 sps:$4 sm:$0xff]   ;;  %v2029_v22 = vld [vmem:[%s2856_s3 + $0x314] ss:$8 sps:$4 sm:$0xff]  }
  0x7d   :  { %1162 = vmatprep.subr.bf16.mxu1 %v2012_v11  ;;  %v2027_v23 = vld [vmem:[%s2856_s3 + $0x310] ss:$8 sps:$4 sm:$0xff]   ;;  %v2032_v24 = vld [vmem:[%s2856_s3 + $0x304] ss:$8 sps:$4 sm:$0xff]   ;;  %v2030_v25 = vld [vmem:[%s2856_s3 + $0x300] ss:$8 sps:$4 sm:$0xff]  }
  0x7e   :  { %v2035_v26 = vld [vmem:[%s2856_s3 + $0x3f4] ss:$8 sps:$4 sm:$0xff]   ;;  %v2033_v27 = vld [vmem:[%s2856_s3 + $0x3f0] ss:$8 sps:$4 sm:$0xff]   ;;  %v2038_v28 = vld [vmem:[%s2856_s3 + $0x3e4] ss:$8 sps:$4 sm:$0xff]  }
  0x7f   :  { %1178 = vmatpush1.bf16.msra.mxu0 %v2013_v14  ;;  %v2036_v29 = vld [vmem:[%s2856_s3 + $0x3e0] ss:$8 sps:$4 sm:$0xff]   ;;  %v2041_v30 = vld [vmem:[%s2856_s3 + $0x3d4] ss:$8 sps:$4 sm:$0xff]   ;;  %v2039_v31 = vld [vmem:[%s2856_s3 + $0x3d0] ss:$8 sps:$4 sm:$0xff]  }
  0x80   :  { %1163 = vmatpush2.bf16.msra.mxu1 %v2010_v13  ;;  %1179 = vmatprep.subr.bf16.mxu0 %v2020_v15  ;;  %v2044_v32 = vld [vmem:[%s2856_s3 + $0x3c4] ss:$8 sps:$4 sm:$0xff]   ;;  %v2042_v33 = vld [vmem:[%s2856_s3 + $0x3c0] ss:$8 sps:$4 sm:$0xff]   ;;  %v2047_v34 = vld [vmem:[%s2856_s3 + $0x3b4] ss:$8 sps:$4 sm:$0xff]  }
  0x81   :  { %v2045_v35 = vld [vmem:[%s2856_s3 + $0x3b0] ss:$8 sps:$4 sm:$0xff]   ;;  %v2050_v36 = vld [vmem:[%s2856_s3 + $0x3a4] ss:$8 sps:$4 sm:$0xff]   ;;  %v2048_v37 = vld [vmem:[%s2856_s3 + $0x3a0] ss:$8 sps:$4 sm:$0xff]  }
  0x82   :  { %v2053_v38 = vld [vmem:[%s2856_s3 + $0x394] ss:$8 sps:$4 sm:$0xff]   ;;  %v2051_v39 = vld [vmem:[%s2856_s3 + $0x390] ss:$8 sps:$4 sm:$0xff]   ;;  %v2056_v40 = vld [vmem:[%s2856_s3 + $0x384] ss:$8 sps:$4 sm:$0xff]  }
  0x83   :  { %1165 = vmatmul.mubr.bf16.vlgmr.msra.gmra.mxu1 %v1651_v16  ;;  %1180 = vmatpush1.bf16.msra.mxu0 %v2018_v17  ;;  %v2054_v41 = vld [vmem:[%s2856_s3 + $0x380] ss:$8 sps:$4 sm:$0xff]   ;;  %v2059_v43 = vld [vmem:[%s2859_s6 + $0x38] sm:$0xff]   ;;  %v2157_v45 = vmov 0   ;;  %v2061_v46 = vld [vmem:[%s2859_s6 + $0x30] sm:$0xff]   ;;  %s2158_s1 = smov [#allocation2]  }
  0x84   :  { %1181 = vmatprep.subr.bf16.mxu0 %v2023_v18  ;;  %v2060_v44 = vld [vmem:[%s2860_s7 + $0x38] sm:$0xff]   ;;  %1369 = vmatprep.subr.bf16.mxu1 %v2157_v45  ;;  %v2062_v47 = vld [vmem:[%s2860_s7 + $0x30] sm:$0xff]   ;;  %v2063_v48 = vld [vmem:[%s2859_s6 + $0x28] sm:$0xff]   ;;  %s1582_s14 = sshll.u32 %s2158_s1, 4  ;;  %vm1569_vm6 = vcmask 244736   ;;  %s1583_s14 = int_to_ptr.vmem [resolvable:$true] %s1582_s14 }
  0x85   :  { %1370 = vmatpush1.bf16.msra.mxu1 %v2059_v43  ;;  %v2064_v49 = vld [vmem:[%s2860_s7 + $0x28] sm:$0xff]   ;;  %v2065_v50 = vld [vmem:[%s2859_s6 + $0x20] sm:$0xff]   ;;  %v2067_v52 = vld [vmem:[%s2859_s6 + $0x18] sm:$0xff]   ;;  %p2098_p1 = scmp.lt.s32.totalorder %s1583_s14, %s1583_s14 }
  0x86   :  { %1371 = vmatprep.subr.bf16.mxu1 %v2157_v45  ;;  %v2066_v51 = vld [vmem:[%s2860_s7 + $0x20] sm:$0xff]   ;;  %v2068_v53 = vld [vmem:[%s2860_s7 + $0x18] sm:$0xff]   ;;  %v2069_v54 = vld [vmem:[%s2859_s6 + $0x10] sm:$0xff]  }
  0x87   :  { %1182 = vmatpush1.bf16.msra.mxu0 %v2021_v19  ;;  %v2070_v55 = vld [vmem:[%s2860_s7 + $0x10] sm:$0xff]   ;;  %v2071_v57 = vld [vmem:[%s2859_s6 + $0x8] sm:$0xff]   ;;  %v2073_v61 = vld [vmem:[%s2859_s6] sm:$0xff]  }
  0x88   :  { %1183 = vmatprep.subr.bf16.mxu0 %v2026_v20  ;;  %v2072_v58 = vld [vmem:[%s2860_s7 + $0x8] sm:$0xff]   ;;  %v2074_v62 = vld [vmem:[%s2860_s7] sm:$0xff]   ;;  %v2077_v4 = vld [vmem:[%s2859_s6 + $0x58] sm:$0xff]  }
  0x89   :  { %1372 = vmatpush1.bf16.msra.mxu1 %v2061_v46  ;;  %v2075_v0 = vld [vmem:[%s2859_s6 + $0x60] ss:$0 sps:$4 sm:$0xff]   ;;  %v2078_v5 = vld [vmem:[%s2860_s7 + $0x58] sm:$0xff]   ;;  %v2079_v10 = vld [vmem:[%s2859_s6 + $0x50] sm:$0xff]  }
  0x8a   :  { %1373 = vmatprep.subr.bf16.mxu1 %v2157_v45  ;;  %v2076_v1 = vld [vmem:[%s2860_s7 + $0x60] ss:$0 sps:$4 sm:$0xff]   ;;  %v1367_v2 = vsel %vm334_vm0, %v2075_v0, 0  ;;  %v2080_v11 = vld [vmem:[%s2860_s7 + $0x50] sm:$0xff]   ;;  %v2081_v14 = vld [vmem:[%s2859_s6 + $0x48] sm:$0xff]  }
  0x8b   :  { %1184 = vmatpush1.bf16.msra.mxu0 %v2024_v21  ;;  %v1517_v3 = vsel %vm334_vm0, %v2076_v1, 0  ;;  %v2082_v15 = vld [vmem:[%s2860_s7 + $0x48] sm:$0xff]   ;;  %v2083_v16 = vld [vmem:[%s2859_s6 + $0x40] sm:$0xff]  }
  0x8c   :  { %1185 = vmatprep.subr.bf16.mxu0 %v2029_v22  ;;  %v2084_v17 = vld [vmem:[%s2860_s7 + $0x40] sm:$0xff]  }
  0x8d   :  { %1374 = vmatpush1.bf16.msra.mxu1 %v2063_v48 }
  0x8e   :  { %1375 = vmatprep.subr.bf16.mxu1 %v2157_v45 }
  0x8f   :  { %1186 = vmatpush1.bf16.msra.mxu0 %v2027_v23 }
  0x90   :  { %1187 = vmatprep.subr.bf16.mxu0 %v2032_v24 }
  0x91   :  { %1376 = vmatpush1.bf16.msra.mxu1 %v2065_v50 }
  0x92   :  { %1377 = vmatprep.subr.bf16.mxu1 %v2157_v45 }
  0x93   :  { %1188 = vmatpush1.bf16.msra.mxu0 %v2030_v25 }
  0x94   :  { %1189 = vmatprep.subr.bf16.mxu0 %v2035_v26 }
  0x95   :  { %1378 = vmatpush1.bf16.msra.mxu1 %v2067_v52 }
  0x96   :  { %1379 = vmatprep.subr.bf16.mxu1 %v2157_v45 }
  0x97   :  { %1190 = vmatpush2.bf16.msra.mxu0 %v2033_v27  ;;  %v1216_v27 = vlaneseq }
  0x98   :  { %1191 = vmatprep.subr.bf16.mxu0 %v2038_v28 }
  0x99   :  { %1380 = vmatpush1.bf16.msra.mxu1 %v2069_v54  ;;  %v1217_v28 = vshrl.u32 %v1216_v27, 7 }
  0x9a   :  { %1381 = vmatprep.subr.bf16.mxu1 %v2157_v45 }
  0x9b   :  { %1192 = vmatpush2.bf16.msra.mxu0 %v2036_v29  ;;  %v1218_v29 = vsub.s32 0, %v1217_v28 }
  0x9c   :  { %1193 = vmatprep.subr.bf16.mxu0 %v2041_v30  ;;  %v1214_v30 = vld [vmem:[%s2858_s5] sm:$0x3] }
  0x9d   :  { %1382 = vmatpush1.bf16.msra.mxu1 %v2071_v57 }
  0x9e   :  { %1383 = vmatprep.subr.bf16.mxu1 %v2157_v45 }
  0x9f   :  { %1194 = vmatpush2.bf16.msra.mxu0 %v2039_v31  ;;  %v1222_v31 = vsub.s32 1, %v1217_v28 }
  0xa0   :  { %1195 = vmatprep.subr.bf16.mxu0 %v2044_v32 }
  0xa1   :  { %1384 = vmatpush1.bf16.msra.mxu1 %v2073_v61 }
  0xa2   :  { %1391 = vmatprep.subr.bf16.mxu1 %v2157_v45 }
  0xa3   :  { %1196 = vmatpush2.bf16.msra.mxu0 %v2042_v33 }
  0xa4   :  { %1197 = vmatprep.subr.bf16.mxu0 %v2047_v34  ;;  %v1219_v34 = vrot.slane %v1214_v30, %v1218_v29 }
  0xa5   :  { %1392 = vmatpush2.bf16.msra.mxu1 %v1367_v2 }
  0xa6   :  { %1393 = vmatprep.subr.bf16.mxu1 %v2157_v45 }
  0xa7   :  { %1198 = vmatpush2.bf16.msra.mxu0 %v2045_v35 }
  0xa8   :  { %1199 = vmatprep.subr.bf16.mxu0 %v2050_v36 }
  0xa9   :  { %1394 = vmatpush2.bf16.msra.mxu1 %v2077_v4 }
  0xaa   :  { %1395 = vmatprep.subr.bf16.mxu1 %v2157_v45 }
  0xab   :  { %1200 = vmatpush2.bf16.msra.mxu0 %v2048_v37 }
  0xac   :  { %1201 = vmatprep.subr.bf16.mxu0 %v2053_v38  ;;  %v1223_v38 = vrot.slane %v1214_v30, %v1222_v31 }
  0xad   :  { %1396 = vmatpush2.bf16.msra.mxu1 %v2079_v10 }
  0xae   :  { %1397 = vmatprep.subr.bf16.mxu1 %v2157_v45 }
  0xaf   :  { %1202 = vmatpush2.bf16.msra.mxu0 %v2051_v39 }
  0xb0   :  { %1203 = vmatprep.subr.bf16.mxu0 %v2056_v40 }
  0xb1   :  { %1398 = vmatpush2.bf16.msra.mxu1 %v2081_v14 }
  0xb2   :  { %1399 = vmatprep.subr.bf16.mxu1 %v2157_v45 }
  0xb3   :  { %1204 = vmatpush2.bf16.msra.mxu0 %v2054_v41 }
  0xb4   :  { %1519 = vmatprep.subr.bf16.mxu0 %v2157_v45 }
  0xb5   :  { %1400 = vmatpush2.bf16.msra.mxu1 %v2083_v16 }
  0xb6   :  { %1206 = vmatmul.mubr.bf16.vlgmr.msra.gmra.mxu0 %v1653_v42 }
  0xb7   :  { %1520 = vmatpush1.bf16.msra.mxu0 %v2060_v44 }
  0xb8   :  { %1521 = vmatprep.subr.bf16.mxu0 %v2157_v45 }
  0xbb   :  { %1522 = vmatpush1.bf16.msra.mxu0 %v2062_v47 }
  0xbc   :  { %1523 = vmatprep.subr.bf16.mxu0 %v2157_v45 }
  0xbf   :  { %1524 = vmatpush1.bf16.msra.mxu0 %v2064_v49 }
  0xc0   :  { %1525 = vmatprep.subr.bf16.mxu0 %v2157_v45 }
  0xc3   :  { %1526 = vmatpush1.bf16.msra.mxu0 %v2066_v51 }
  0xc4   :  { %1527 = vmatprep.subr.bf16.mxu0 %v2157_v45 }
  0xc7   :  { %1528 = vmatpush1.bf16.msra.mxu0 %v2068_v53 }
  0xc8   :  { %1529 = vmatprep.subr.bf16.mxu0 %v2157_v45 }
  0xcb   :  { %1530 = vmatpush1.bf16.msra.mxu0 %v2070_v55 }
  0xcc   :  { %1531 = vmatprep.subr.bf16.mxu0 %v2157_v45 }
  0xcf   :  { %1532 = vmatpush1.bf16.msra.mxu0 %v2072_v58 }
  0xd0   :  { %1533 = vmatprep.subr.bf16.mxu0 %v2157_v45 }
  0xd3   :  { %1534 = vmatpush1.bf16.msra.mxu0 %v2074_v62 }
  0xd4   :  { %1541 = vmatprep.subr.bf16.mxu0 %v2157_v45 }
  0xd7   :  { %1542 = vmatpush2.bf16.msra.mxu0 %v1517_v3 }
  0xd8   :  { %1543 = vmatprep.subr.bf16.mxu0 %v2157_v45 }
  0xdb   :  { %1544 = vmatpush2.bf16.msra.mxu0 %v2078_v5  ;;  %v1785_v5 = vld [vmem:[%s2861_s8] ss:$0 sm:$0xff]  ;;  %s2093_s8 = scalar_lea.vmem %s1583_s14, 128 }
  0xdc   :  { %1545 = vmatprep.subr.bf16.mxu0 %v2157_v45  ;;  %p2094_p0 = scmp.ne.s32.totalorder %s1583_s14, %s2093_s8  ;;  %p2099_p2 = scmp.lt.s32.totalorder %s2093_s8, %s2093_s8 }
  0xde   :  { %p2100_p3 = por %p2099_p2, %p2098_p1 }
  0xdf   :  { %1546 = vmatpush2.bf16.msra.mxu0 %v2080_v11 }
  0xe0   :  { %1547 = vmatprep.subr.bf16.mxu0 %v2157_v45  ;;  %p2101_p4 = pnand %p2100_p3, %p2094_p0 }
  0xe3   :  { %1548 = vmatpush2.bf16.msra.mxu0 %v2082_v15 }
  0xe4   :  { %1549 = vmatprep.subr.bf16.mxu0 %v2157_v45 }
  0xe7   :  { %1550 = vmatpush2.bf16.msra.mxu0 %v2084_v17 }
  0xf6   :  { %v375_v56 = vpop.f32.mrf.mxu0 }
  0xf8   :  { %v377_v59 = vpop.f32.mrf.mxu0 }
  0xfa   :  { %v379_v60 = vpop.f32.mrf.mxu0 }
  0xfc   :  { %v380_v63 = vpop.f32.mrf.mxu0 }
 0x103   :  { %v1084_v6 = vpop.f32.mrf.mxu1 }
 0x104   :  { %v1085_v7 = vadd.f32 %v1084_v6, %v375_v56  ;;  %v1800_v6 = vld [vmem:[%s2862_s9] ss:$0 sm:$0xff] }
 0x105   :  { %v1086_v8 = vpop.f32.mrf.mxu1 }
 0x106   :  { %v1087_v9 = vadd.f32 %v1086_v8, %v377_v59 }
 0x107   :  { %v1088_v12 = vpop.f32.mrf.mxu1 }
 0x109   :  { %v1089_v13 = vpop.f32.mrf.mxu1 }
 0x136   :  { %v1125_v18 = vpop.f32.mrf.mxu0 }
 0x137   :  { %v1126_v19 = vadd.f32 %v1125_v18, %v1085_v7 }
 0x138   :  { %v1127_v20 = vpop.f32.mrf.mxu0 }
 0x139   :  { %v1128_v32 = vadd.f32 %v1127_v20, %v1087_v9 }
 0x13a   :  { %v1129_v21 = vpop.f32.mrf.mxu0 }
 0x13c   :  { %v1130_v22 = vpop.f32.mrf.mxu0 }
 0x143   :  { %v1166_v23 = vpop.f32.mrf.mxu1 }
 0x144   :  { %v1167_v33 = vadd.f32 %v1166_v23, %v1126_v19 }
 0x145   :  { %v1168_v24 = vpop.f32.mrf.mxu1 }
 0x146   :  { %v1169_v36 = vadd.f32 %v1168_v24, %v1128_v32 }
 0x147   :  { %v1170_v25 = vpop.f32.mrf.mxu1 }
 0x149   :  { %v1171_v26 = vpop.f32.mrf.mxu1 }
 0x176   :  { %v1207_v35 = vpop.f32.mrf.mxu0 }
 0x177   :  { %v1208_v37 = vadd.f32 %v1207_v35, %v1167_v33 }
 0x178   :  { %v1209_v39 = vpop.f32.mrf.mxu0 }
 0x179   :  { %v1226_v40 = vadd.f32 %v1219_v34, %v1208_v37  ;;  %v1210_v41 = vadd.f32 %v1209_v39, %v1169_v36 }
 0x17a   :  { %v1211_v42 = vpop.f32.mrf.mxu0 }
 0x17b   :  { %v1227_v43 = vadd.f32 %v1223_v38, %v1210_v41  ;;  %v1230_v45 = vmul.f32 0.16666667, %v1226_v40  ;;  %v1244_v46 = vmul.f32 1.442695, %v1226_v40  ;;  %v1240_v54 = vand.u32 2147483647, %v1226_v40 }
 0x17c   :  { %v1212_v44 = vpop.f32.mrf.mxu0  ;;  %vm1228_vm4 = vcmp.gt.f32.partialorder %v1226_v40, 0.0 }
 0x17d   :  { %v1231_v47 = vmul.f32 0.16666667, %v1227_v43  ;;  %v1246_v48 = vmul.f32 1.442695, %v1227_v43  ;;  %2085 = vpow2.f32 %v1244_v46  ;;  %v1232_v49 = vadd.f32 0.5, %v1230_v45 }
 0x17e   :  { %v1241_v57 = vand.u32 2147483647, %v1227_v43  ;;  %vm1242_vm2 = vcmp.lt.f32.partialorder %v1240_v54, 0.01  ;;  %vm1229_vm5 = vcmp.gt.f32.partialorder %v1227_v43, 0.0 }
 0x17f   :  { %2087 = vpow2.f32 %v1246_v48  ;;  %v1233_v50 = vadd.f32 0.5, %v1231_v47  ;;  %v1234_v51 = vmul.f32 %v1232_v49, %v1226_v40 }
 0x180   :  { %vm1243_vm3 = vcmp.lt.f32.partialorder %v1241_v57, 0.01 }
 0x181   :  { %v1235_v52 = vmul.f32 %v1233_v50, %v1227_v43  ;;  %v1236_v53 = vadd.f32 1.0, %v1234_v51 }
 0x183   :  { %v1237_v55 = vadd.f32 1.0, %v1235_v52  ;;  %v1238_v58 = vmul.f32 %v1236_v53, %v1226_v40 }
 0x185   :  { %v1239_v61 = vmul.f32 %v1237_v55, %v1227_v43 }
 0x18a   :  { %v2086_v56 = vpop.eup %2085 }
 0x18b   :  { %v1783_v59 = vadd.f32 -1.0, %v2086_v56 }
 0x18c   :  { %v2088_v60 = vpop.eup %2087 }
 0x18d   :  { %v1784_v62 = vadd.f32 -1.0, %v2088_v60  ;;  %v1250_v63 = vsel %vm1242_vm2, %v1238_v58, %v1783_v59 }
 0x18e   :  { %v1252_v1 = vsel %vm1228_vm4, %v1226_v40, %v1250_v63 }
 0x18f   :  { %v1251_v0 = vsel %vm1243_vm3, %v1239_v61, %v1784_v62  ;;  %v1254_v4 = vpack.c.bf16 %v1252_v1, %v1252_v1 }
 0x190   :  { %v1253_v2 = vsel %vm1229_vm5, %v1227_v43, %v1251_v0 }
 0x191   :  { %v1255_v3 = vpack.c.bf16 %v1253_v2, %v1253_v2 }
 0x193   :  { %1799 = vmatprep.mubr.msk.bf16.mxu1 %vm330_vm1, %v1255_v3  ;;  %1814 = vmatprep.mubr.msk.bf16.mxu0 %vm330_vm1, %v1255_v3 }
 0x194   :  { %1402 = vmatmul.mubr.bf16.vlgmr.msra.gmra.mxu1 %v1254_v4  ;;  %1552 = vmatmul.mubr.bf16.vlgmr.msra.gmra.mxu0 %v1254_v4 }
 0x254   :  { %v1403_v7 = vpop.f32.mrf.mxu1  ;;  %v1553_v8 = vpop.f32.mrf.mxu0 }
 0x255   :  { %v1404_v9 = vadd.f32 %v1785_v5, %v1403_v7  ;;  %v1554_v10 = vadd.f32 %v1800_v6, %v1553_v8 }
 0x256   :  { %v1405_v11 = vpop.f32.mrf.mxu1  ;;  %v1555_v12 = vpop.f32.mrf.mxu0 }
 0x257   :  { %v1560_v13 = vand.u32 2147483647, %v1554_v10  ;;  %1570 = vst.msk [vmem:[#allocation2] sm:$0xff] %vm1569_vm6, %v1404_v9 }
 0x258   :  { %v1406_v14 = vpop.f32.mrf.mxu1  ;;  %v1556_v15 = vpop.f32.mrf.mxu0 }
 0x259   :  { %2104 = shalt.err (!%p2101_p4)
}
 0x25a   :  { %1585 = dma.vmem_to_hbm [thread:$0]  %s1583_s14, 128, %s2863_s10, [#allocation3]   ;;  %v1561_v16 = vsub.f32 0.0, %v1560_v13  ;;  %v1407_v17 = vpop.f32.mrf.mxu1  ;;  %v1557_v18 = vpop.f32.mrf.mxu0  ;;  %v1559_v23 = vmax.f32 %v1554_v10, 0.0  ;;  %v1572_v26 = vld [vmem:[%s2855_s2] sm:$0xff] }
 0x25b   :  { %s2159_s16 = smov [#allocation4]   ;;  %s2160_s10 = smov [#allocation6]  }
 0x25c   :  { %v1562_v19 = vmul.f32 1.442695, %v1561_v16  ;;  %s1592_s17 = sshll.u32 %s2159_s16, 4  ;;  %s1602_s20 = sshll.u32 %s2160_s10, 4  ;;  %s1593_s17 = int_to_ptr.vmem [resolvable:$true] %s1592_s17  ;;  %s1603_s20 = int_to_ptr.vmem [resolvable:$true] %s1602_s20 }
 0x25d   :  { %s2113_s21 = scalar_lea.vmem %s1593_s17, 128  ;;  %p2118_p6 = scmp.lt.s32.totalorder %s1593_s17, %s1593_s17 }
 0x25e   :  { %2089 = vpow2.f32 %v1562_v19  ;;  %p2114_p5 = scmp.ne.s32.totalorder %s1593_s17, %s2113_s21  ;;  %p2119_p7 = scmp.lt.s32.totalorder %s2113_s21, %s2113_s21 }
 0x260   :  { %p2120_p8 = por %p2119_p7, %p2118_p6 }
 0x262   :  { %p2121_p9 = pnand %p2120_p8, %p2114_p5 }
 0x26b   :  { %v2090_v20 = vpop.eup %2089 }
 0x26c   :  { %v1564_v21 = vadd.f32 1.0, %v2090_v20 }
 0x26e   :  { %2091 = vlog2.f32 %v1564_v21 }
 0x27b   :  { %v2092_v22 = vpop.eup %2091 }
 0x27c   :  { %v1566_v24 = vmul.f32 0.6931472, %v2092_v22 }
 0x27e   :  { %v1567_v25 = vadd.f32 %v1566_v24, %v1559_v23 }
 0x280   :  { %v1568_v27 = vadd.f32 0.1, %v1567_v25 }
 0x282   :  { %1571 = vst.msk [vmem:[#allocation4] sm:$0xff] %vm1569_vm6, %v1568_v27  ;;  %v1573_v28 = vmul.f32 %v1572_v26, %v1568_v27 }
 0x283   :  { %2124 = shalt.err (!%p2121_p9)
}
 0x284   :  { %1595 = dma.vmem_to_hbm [thread:$0]  %s1593_s17, 128, %s2864_s11, [#allocation5]   ;;  %v1574_v29 = vadd.f32 %v1573_v28, %v1404_v9 }
 0x285   :  { %s2133_s2 = scalar_lea.vmem %s1603_s20, 128  ;;  %p2138_p11 = scmp.lt.s32.totalorder %s1603_s20, %s1603_s20 }
 0x286   :  { %1575 = vst.msk [vmem:[#allocation6] sm:$0xff] %vm1569_vm6, %v1574_v29  ;;  %p2134_p10 = scmp.ne.s32.totalorder %s1603_s20, %s2133_s2  ;;  %p2139_p12 = scmp.lt.s32.totalorder %s2133_s2, %s2133_s2 }
 0x288   :  { %p2140_p13 = por %p2139_p12, %p2138_p11 }
 0x28a   :  { %p2141_p0 = pnand %p2140_p13, %p2134_p10 }
 0x28c   :  { %2144 = shalt.err (!%p2141_p0)
}
 0x28d   :  { %1605 = dma.vmem_to_hbm [thread:$0]  %s1603_s20, 128, %s2865_s12, [#allocation5]  }
 0x28e   :  { %2153 = dma.done.wait [#allocation3], 128  }
 0x28f   :  { %2154 = vsyncadd [#allocation3], 4294967168 }
 0x290   :  { %2155 = dma.done.wait [#allocation5], 256  }
 0x291   :  { %2156 = vsyncadd [#allocation5], 4294967040 }
 0x292   :  { %1615 = vsyncpa [#allocation3], 1 }
 0x293   :  { %1616 = vsyncpa [#allocation5], 1 }

</bundles_post_ra>
